<compile_context>
chip_gen: v7x
topology: tpu7x:2x2x1
jax: 0.10.0
libtpu: 0.0.40
codegen_flags: <defaults>
</compile_context>

<pallas_src>
import jax
import jax.numpy as jnp
from jax import lax
from jax.experimental import pallas as pl
from jax.experimental.pallas import tpu as pltpu


def _round_up(x, m):
    return -(-x // m) * m


# ---------------------------------------------------------------------------
# Kernel
# ---------------------------------------------------------------------------
def _make_conv_mixer_kernel(BT, L, K, pad, H, F, CP):
    M = BT * L                          # MXU M dim (batch folded into rows)
    KH, KF = K * H, K * F               # useful contraction widths
    KHp, KFp = _round_up(KH, 128), _round_up(KF, 128)

    def kernel(x_ref, mask_ref,
               w0a_ref, b0a_ref, w0b_ref, b0b_ref,
               w1a_ref, b1a_ref, w1b_ref, b1b_ref,
               wout_ref, bout_ref, out_ref):
        # bf16 lane-padded input; residual / elementwise math runs in f32.
        x = x_ref[...].astype(jnp.float32)                    # (BT, L, CP)

        # Zero halos / column pads hoisted once (JAX does not CSE broadcasts).
        halo_h = jnp.zeros((BT, pad, H), jnp.bfloat16)
        halo_f = jnp.zeros((BT, pad, F), jnp.bfloat16)
        cpad_h = jnp.zeros((BT, L, KHp - KH), jnp.bfloat16) if KHp > KH else None
        cpad_f = jnp.zeros((BT, L, KFp - KF), jnp.bfloat16) if KFp > KF else None

        def make_conv(cin, kp, halo, cpad):
            def conv_relu(v, w_ref, b_ref):
                # 'same' Conv1d as a single im2col matmul:
                #   (M, round_up(K*cin,128)) @ (round_up(K*cin,128), CP)
                # bf16 operands / f32 accumulation; only the useful cin
                # channels of each tap are packed (no per-tap CP padding) --
                # the sub-128-lane packing rides the XLU while the MXU works.
                vb = v[:, :, :cin].astype(jnp.bfloat16)        # (BT, L, cin)
                vp = jnp.concatenate([halo, vb, halo], axis=1)  # (BT, L+2p, cin)
                taps = [vp[:, d:d + L, :] for d in range(K)]
                if cpad is not None:
                    taps.append(cpad)
                lhs = jnp.concatenate(taps, axis=-1).reshape(M, kp)
                y = jnp.dot(lhs, w_ref[...],
                            preferred_element_type=jnp.float32)  # (M, CP) f32
                y = y.reshape(BT, L, CP) + b_ref[...]             # bias in f32
                return jax.nn.relu(y)
            return conv_relu

        conv_hf = make_conv(H, KHp, halo_h, cpad_h)   # Conv(H -> F) + ReLU
        conv_fh = make_conv(F, KFp, halo_f, cpad_f)   # Conv(F -> H) + ReLU

        # conv1d_0 (Dropout = identity in eval mode)
        f0 = conv_fh(conv_hf(x, w0a_ref, b0a_ref), w0b_ref, b0b_ref)
        # conv1d_1 applied to the residual (fusion + fusion_)
        f1 = conv_fh(conv_hf(x + f0, w1a_ref, b1a_ref), w1b_ref, b1b_ref)
        # out_linear: 1x1 conv == plain matmul (padded channels of x+f1 are 0)
        z = (x + f1).reshape(M, CP).astype(jnp.bfloat16)
        out = jnp.dot(z, wout_ref[...], preferred_element_type=jnp.float32)
        out = out.reshape(BT, L, CP) + bout_ref[...]
        # Fused masked_fill(x_mask.unsqueeze(-1), 0) + bf16 store.
        out = jnp.where(mask_ref[...] > 0.5, 0.0, out)
        out_ref[...] = out.astype(out_ref.dtype)

    return kernel


# ---------------------------------------------------------------------------
# Wrapper helpers
# ---------------------------------------------------------------------------
def _vmem_limit_bytes():
    """Gate the VMEM limit on the actual part (v7x: 64 MiB, v5e/v6e: 128 MiB)."""
    try:
        cap = getattr(pltpu.get_tpu_info(), "vmem_capacity_bytes", None)
        if cap:
            # leave headroom: <= 3/4 of physical, capped at 96 MiB
            return int(min(cap * 3 // 4, 96 * 1024 * 1024))
    except Exception:
        pass
    return 32 * 1024 * 1024


def _pick_batch_tile(B, L, target_m=512, min_m=128):
    """Fold batch into the MXU M dim.  Aim for M = BT*L >= target_m (v6e/v7x
    MXU is 256 deep) while preferring >=2 grid steps (2 TensorCores on v7x)
    when the per-step M stays >= min_m."""
    divs = [d for d in range(1, B + 1) if B % d == 0]
    reach = [d for d in divs if d * L >= target_m]
    cap = min(reach) if reach else max(divs)
    two_step = [d for d in divs if d < B and d <= cap and d * L >= min_m]
    if two_step:
        return max(two_step)
    return cap


def _cap_bt_for_vmem(B, L, bt, vmem_budget):
    """Keep the in-kernel live set (f32 x/f0/f1, bf16 im2col temps, 2x-buffered
    bf16 in/out blocks) comfortably inside the VMEM budget."""
    bytes_per_pos = 8 * 1024            # rough upper bound per (b, l) position
    cap = max(1, vmem_budget // (L * bytes_per_pos))
    bt = min(bt, cap)
    while B % bt:
        bt -= 1
    return bt


def _prepare_kernel_params(pt, H, F, K, CP):
    """PyTorch layouts (C_out, C_in, K) -> compact im2col bf16 layouts."""
    def conv_w(W, cin, cout):
        kp = _round_up(K * cin, 128)
        wt = jnp.transpose(W, (2, 1, 0)).reshape(K * cin, cout)  # (K*Cin, Cout)
        wt = jnp.pad(wt, ((0, kp - K * cin), (0, CP - cout)))
        return wt.astype(jnp.bfloat16)                           # (kp, CP)

    def bias(b, c):
        # zero padding beyond c keeps padded output channels at relu(0)=0
        return jnp.pad(b, (0, CP - c)).reshape(1, CP).astype(jnp.float32)

    wout = jnp.transpose(pt["Wout"][:, :, 0], (1, 0))             # (C_in, C_out)
    wout = jnp.pad(wout, ((0, CP - H), (0, CP - H))).astype(jnp.bfloat16)
    return {
        "w0a": conv_w(pt["W0a"], H, F), "b0a": bias(pt["B0a"], F),
        "w0b": conv_w(pt["W0b"], F, H), "b0b": bias(pt["B0b"], H),
        "w1a": conv_w(pt["W1a"], H, F), "b1a": bias(pt["B1a"], F),
        "w1b": conv_w(pt["W1b"], F, H), "b1b": bias(pt["B1b"], H),
        "wout": wout, "bout": bias(pt["Bout"], H),
    }


# ---------------------------------------------------------------------------
# Forward
# ---------------------------------------------------------------------------
def conv_mixer_forward(fusion, x_mask, pt_params, *, batch_tile=None):
    """fusion: (B, L, H) f32; x_mask: (B, L) bool; pt_params: PyTorch weights."""
    B, L, H = fusion.shape
    F, H_w, K = pt_params["W0a"].shape
    assert H_w == H and x_mask.shape == (B, L)
    assert K % 2 == 1, "conv_mixer assumes odd kernel_size (padding=K//2)"
    pad = K // 2
    CP = 128 * (-(-max(H, F) // 128))          # output lane width (128-padded)
    KHp, KFp = _round_up(K * H, 128), _round_up(K * F, 128)

    kp = _prepare_kernel_params(pt_params, H, F, K, CP)

    vmem_budget = _vmem_limit_bytes()
    BT = batch_tile if batch_tile is not None else _pick_batch_tile(B, L)
    BT = _cap_bt_for_vmem(B, L, BT, vmem_budget)
    assert B % BT == 0
    grid = (B // BT,)
    multi_step = (B // BT) > 1

    # Lane-pad activations once in the wrapper, stored bf16 (halves input DMA;
    # padded channels stay zero).  Mask as (B, L, 1) f32 for the fused select.
    xp = jnp.pad(fusion, ((0, 0), (0, 0), (0, CP - H))).astype(jnp.bfloat16)
    mask = x_mask.astype(jnp.float32)[..., None]

    kernel = _make_conv_mixer_kernel(BT, L, K, pad, H, F, CP)

    weight_names = ["w0a", "b0a", "w0b", "b0b",
                    "w1a", "b1a", "w1b", "b1b", "wout", "bout"]
    weight_args = [kp[n] for n in weight_names]

    def wspec(arr):
        nd = arr.ndim
        idx = lambda i, _nd=nd: (0,) * _nd       # grid-invariant block index
        if multi_step:
            try:
                # Single-buffer grid-invariant weights: frees VMEM headroom.
                return pl.BlockSpec(arr.shape, idx, pipeline_mode=pl.Buffered(1))
            except TypeError:
                pass
        return pl.BlockSpec(arr.shape, idx)

    in_specs = [pl.BlockSpec((BT, L, CP), lambda i: (i, 0, 0)),
                pl.BlockSpec((BT, L, 1), lambda i: (i, 0, 0))] + \
               [wspec(w) for w in weight_args]
    out_spec = pl.BlockSpec((BT, L, CP), lambda i: (i, 0, 0))

    # Cheap scheduling hint for XLA around the custom call.
    flops = int(2 * B * L * CP * (2 * KHp + 2 * KFp + CP))
    bytes_accessed = int(sum(int(a.size) * a.dtype.itemsize
                             for a in (xp, mask, *weight_args)) + B * L * CP * 2)
    try:
        cost = pl.CostEstimate(flops=flops, transcendentals=0,
                               bytes_accessed=bytes_accessed)
    except Exception:
        cost = None

    out_padded = pl.pallas_call(
        kernel,
        out_shape=jax.ShapeDtypeStruct((B, L, CP), jnp.bfloat16),
        grid=grid,
        in_specs=in_specs,
        out_specs=out_spec,
        compiler_params=pltpu.CompilerParams(
            dimension_semantics=("parallel",),
            vmem_limit_bytes=vmem_budget),
        cost_estimate=cost,
    )(xp, mask, *weight_args)

    # Mask already applied in-kernel; only slice the useful channels + upcast.
    return out_padded[:, :, :H].astype(fusion.dtype)


# ---------------------------------------------------------------------------
# Reference (pure JAX, f32, mirrors the PyTorch forward in eval mode)
# ---------------------------------------------------------------------------
def _init_pt_params(key, H, F, K):
    ks = jax.random.split(key, 10)

    def u(k, shape, fan_in):
        bound = 1.0 / jnp.sqrt(fan_in)
        return jax.random.uniform(k, shape, jnp.float32, -bound, bound)

    return {
        "W0a": u(ks[0], (F, H, K), H * K), "B0a": u(ks[1], (F,), H * K),
        "W0b": u(ks[2], (H, F, K), F * K), "B0b": u(ks[3], (H,), F * K),
        "W1a": u(ks[4], (F, H, K), H * K), "B1a": u(ks[5], (F,), H * K),
        "W1b": u(ks[6], (H, F, K), F * K), "B1b": u(ks[7], (H,), F * K),
        "Wout": u(ks[8], (H, H, 1), H),    "Bout": u(ks[9], (H,), H),
    }


def _reference_forward(fusion, x_mask, pt, K):
    pad = K // 2
    x = jnp.transpose(fusion, (0, 2, 1))                 # (B, H, L) == NCW
    dn = ("NCH", "OIH", "NCH")

    def conv(v, W, b, p):
        y = lax.conv_general_dilated(v, W, window_strides=(1,),
                                     padding=[(p, p)], dimension_numbers=dn)
        return y + b[None, :, None]

    h = jax.nn.relu(conv(x, pt["W0a"], pt["B0a"], pad))
    f0 = jax.nn.relu(conv(h, pt["W0b"], pt["B0b"], pad))
    z = x + f0
    h = jax.nn.relu(conv(z, pt["W1a"], pt["B1a"], pad))
    f1 = jax.nn.relu(conv(h, pt["W1b"], pt["B1b"], pad))
    out = conv(x + f1, pt["Wout"], pt["Bout"], 0)
    out = jnp.transpose(out, (0, 2, 1))                  # (B, L, H)
    return jnp.where(x_mask[..., None], 0.0, out)


if __name__ == "__main__":
    # model_config implied shapes: encoder_hidden=32, filter_channel=64, 1d_kernel=3
    B, L, H, F, K = 2, 16, 32, 64, 3

    key = jax.random.PRNGKey(0)
    k_in, k_w = jax.random.split(key)
    fusion = jax.random.normal(k_in, (B, L, H), dtype=jnp.float32)
    # mask out the tail of each sequence (True = positions to zero)
    x_mask = jnp.arange(L)[None, :] >= jnp.array([[L], [L - 4]])  # (B, L) bool

    pt_params = _init_pt_params(k_w, H, F, K)

    out = conv_mixer_forward(fusion, x_mask, pt_params)
    out = jax.block_until_ready(out)

    ref = _reference_forward(fusion, x_mask, pt_params, K)
    assert out.shape == (B, L, H)
    # bf16 input/operands/output with f32 accumulation vs. f32 reference.
    assert jnp.allclose(out, ref, atol=5e-2, rtol=5e-2), "mismatch vs reference"

    print("KERNEL_OK")
</pallas_src>

<mosaic_0001>
module attributes {stable_mosaic.version = 11 : i64} {
  func.func @kernel(%arg0: i32, %arg1: memref<2x16x128xbf16, #tpu.memory_space<vmem>>, %arg2: memref<2x16x1xf32, #tpu.memory_space<vmem>>, %arg3: memref<128x128xbf16, #tpu.memory_space<vmem>>, %arg4: memref<1x128xf32, #tpu.memory_space<vmem>>, %arg5: memref<256x128xbf16, #tpu.memory_space<vmem>>, %arg6: memref<1x128xf32, #tpu.memory_space<vmem>>, %arg7: memref<128x128xbf16, #tpu.memory_space<vmem>>, %arg8: memref<1x128xf32, #tpu.memory_space<vmem>>, %arg9: memref<256x128xbf16, #tpu.memory_space<vmem>>, %arg10: memref<1x128xf32, #tpu.memory_space<vmem>>, %arg11: memref<128x128xbf16, #tpu.memory_space<vmem>>, %arg12: memref<1x128xf32, #tpu.memory_space<vmem>>, %arg13: memref<2x16x128xbf16, #tpu.memory_space<vmem>>) attributes {dimension_semantics = [#tpu.dimension_semantics<parallel>], iteration_bounds = array<i64: 1>, scalar_prefetch = 0 : i64, scratch_operands = 0 : i64, tpu.core_type = #tpu.core_type<tc>, window_params = [{transform_indices = @transform_0, window_bounds = array<i64: 2, 16, 128>}, {transform_indices = @transform_1, window_bounds = array<i64: 2, 16, 1>}, {pipeline_mode = #tpu.pipeline_mode<synchronous>, transform_indices = @transform_2, window_bounds = array<i64: 128, 128>}, {pipeline_mode = #tpu.pipeline_mode<synchronous>, transform_indices = @transform_3, window_bounds = array<i64: 1, 128>}, {pipeline_mode = #tpu.pipeline_mode<synchronous>, transform_indices = @transform_4, window_bounds = array<i64: 256, 128>}, {pipeline_mode = #tpu.pipeline_mode<synchronous>, transform_indices = @transform_5, window_bounds = array<i64: 1, 128>}, {pipeline_mode = #tpu.pipeline_mode<synchronous>, transform_indices = @transform_6, window_bounds = array<i64: 128, 128>}, {pipeline_mode = #tpu.pipeline_mode<synchronous>, transform_indices = @transform_7, window_bounds = array<i64: 1, 128>}, {pipeline_mode = #tpu.pipeline_mode<synchronous>, transform_indices = @transform_8, window_bounds = array<i64: 256, 128>}, {pipeline_mode = #tpu.pipeline_mode<synchronous>, transform_indices = @transform_9, window_bounds = array<i64: 1, 128>}, {pipeline_mode = #tpu.pipeline_mode<synchronous>, transform_indices = @transform_10, window_bounds = array<i64: 128, 128>}, {pipeline_mode = #tpu.pipeline_mode<synchronous>, transform_indices = @transform_11, window_bounds = array<i64: 1, 128>}, {transform_indices = @transform_12, window_bounds = array<i64: 2, 16, 128>}]} {
    %c0 = arith.constant 0 : index
    %c0_0 = arith.constant 0 : index
    %c0_1 = arith.constant 0 : index
    %0 = vector.load %arg1[%c0, %c0_0, %c0_1] : memref<2x16x128xbf16, #tpu.memory_space<vmem>>, vector<2x16x128xbf16>
    %1 = arith.extf %0 : vector<2x16x128xbf16> to vector<2x16x128xf32>
    %cst = arith.constant 0.000000e+00 : bf16
    %2 = vector.broadcast %cst : bf16 to vector<2x1x32xbf16>
    %cst_2 = arith.constant 0.000000e+00 : bf16
    %3 = vector.broadcast %cst_2 : bf16 to vector<2x1x64xbf16>
    %cst_3 = arith.constant 0.000000e+00 : bf16
    %4 = vector.broadcast %cst_3 : bf16 to vector<2x16x32xbf16>
    %cst_4 = arith.constant 0.000000e+00 : bf16
    %5 = vector.broadcast %cst_4 : bf16 to vector<2x16x64xbf16>
    %6 = vector.extract_strided_slice %1 {offsets = [0, 0, 0], sizes = [2, 16, 32], strides = [1, 1, 1]} : vector<2x16x128xf32> to vector<2x16x32xf32>
    %7 = arith.truncf %6 : vector<2x16x32xf32> to vector<2x16x32xbf16>
    %8 = tpu.concatenate %2, %7, %2 in 1 : vector<2x1x32xbf16>, vector<2x16x32xbf16>, vector<2x1x32xbf16> -> vector<2x18x32xbf16>
    %9 = vector.extract_strided_slice %8 {offsets = [0, 0, 0], sizes = [2, 16, 32], strides = [1, 1, 1]} : vector<2x18x32xbf16> to vector<2x16x32xbf16>
    %10 = vector.extract_strided_slice %8 {offsets = [0, 1, 0], sizes = [2, 16, 32], strides = [1, 1, 1]} : vector<2x18x32xbf16> to vector<2x16x32xbf16>
    %11 = vector.extract_strided_slice %8 {offsets = [0, 2, 0], sizes = [2, 16, 32], strides = [1, 1, 1]} : vector<2x18x32xbf16> to vector<2x16x32xbf16>
    %12 = tpu.concatenate %9, %10, %11, %4 in 2 : vector<2x16x32xbf16>, vector<2x16x32xbf16>, vector<2x16x32xbf16>, vector<2x16x32xbf16> -> vector<2x16x128xbf16>
    %13 = vector.shape_cast %12 : vector<2x16x128xbf16> to vector<32x128xbf16>
    %c0_5 = arith.constant 0 : index
    %c0_6 = arith.constant 0 : index
    %14 = vector.load %arg3[%c0_5, %c0_6] : memref<128x128xbf16, #tpu.memory_space<vmem>>, vector<128x128xbf16>
    %cst_7 = arith.constant dense<0.000000e+00> : vector<32x128xf32>
    %15 = tpu.matmul %13, %14, %cst_7 {dimension_numbers = #tpu.dot_dimension_numbers<[1], [0], [0], [1], [0, 0, 1, 1], [], []>} : vector<32x128xbf16>, vector<128x128xbf16>, vector<32x128xf32> -> vector<32x128xf32>
    %16 = vector.shape_cast %15 : vector<32x128xf32> to vector<2x16x128xf32>
    %c0_8 = arith.constant 0 : index
    %c0_9 = arith.constant 0 : index
    %17 = vector.load %arg4[%c0_8, %c0_9] : memref<1x128xf32, #tpu.memory_space<vmem>>, vector<1x128xf32>
    %18 = vector.shape_cast %17 : vector<1x128xf32> to vector<1x1x128xf32>
    %19 = vector.broadcast %18 : vector<1x1x128xf32> to vector<2x16x128xf32>
    %20 = arith.addf %16, %19 : vector<2x16x128xf32>
    %cst_10 = arith.constant 0.000000e+00 : f32
    %21 = vector.broadcast %cst_10 : f32 to vector<2x16x128xf32>
    %22 = arith.maximumf %20, %21 : vector<2x16x128xf32>
    %23 = vector.extract_strided_slice %22 {offsets = [0, 0, 0], sizes = [2, 16, 64], strides = [1, 1, 1]} : vector<2x16x128xf32> to vector<2x16x64xf32>
    %24 = arith.truncf %23 : vector<2x16x64xf32> to vector<2x16x64xbf16>
    %25 = tpu.concatenate %3, %24, %3 in 1 : vector<2x1x64xbf16>, vector<2x16x64xbf16>, vector<2x1x64xbf16> -> vector<2x18x64xbf16>
    %26 = vector.extract_strided_slice %25 {offsets = [0, 0, 0], sizes = [2, 16, 64], strides = [1, 1, 1]} : vector<2x18x64xbf16> to vector<2x16x64xbf16>
    %27 = vector.extract_strided_slice %25 {offsets = [0, 1, 0], sizes = [2, 16, 64], strides = [1, 1, 1]} : vector<2x18x64xbf16> to vector<2x16x64xbf16>
    %28 = vector.extract_strided_slice %25 {offsets = [0, 2, 0], sizes = [2, 16, 64], strides = [1, 1, 1]} : vector<2x18x64xbf16> to vector<2x16x64xbf16>
    %29 = tpu.concatenate %26, %27, %28, %5 in 2 : vector<2x16x64xbf16>, vector<2x16x64xbf16>, vector<2x16x64xbf16>, vector<2x16x64xbf16> -> vector<2x16x256xbf16>
    %30 = vector.shape_cast %29 : vector<2x16x256xbf16> to vector<32x256xbf16>
    %c0_11 = arith.constant 0 : index
    %c0_12 = arith.constant 0 : index
    %31 = vector.load %arg5[%c0_11, %c0_12] : memref<256x128xbf16, #tpu.memory_space<vmem>>, vector<256x128xbf16>
    %cst_13 = arith.constant dense<0.000000e+00> : vector<32x128xf32>
    %32 = tpu.matmul %30, %31, %cst_13 {dimension_numbers = #tpu.dot_dimension_numbers<[1], [0], [0], [1], [0, 0, 1, 1], [], []>} : vector<32x256xbf16>, vector<256x128xbf16>, vector<32x128xf32> -> vector<32x128xf32>
    %33 = vector.shape_cast %32 : vector<32x128xf32> to vector<2x16x128xf32>
    %c0_14 = arith.constant 0 : index
    %c0_15 = arith.constant 0 : index
    %34 = vector.load %arg6[%c0_14, %c0_15] : memref<1x128xf32, #tpu.memory_space<vmem>>, vector<1x128xf32>
    %35 = vector.shape_cast %34 : vector<1x128xf32> to vector<1x1x128xf32>
    %36 = vector.broadcast %35 : vector<1x1x128xf32> to vector<2x16x128xf32>
    %37 = arith.addf %33, %36 : vector<2x16x128xf32>
    %cst_16 = arith.constant 0.000000e+00 : f32
    %38 = vector.broadcast %cst_16 : f32 to vector<2x16x128xf32>
    %39 = arith.maximumf %37, %38 : vector<2x16x128xf32>
    %40 = arith.addf %1, %39 : vector<2x16x128xf32>
    %41 = vector.extract_strided_slice %40 {offsets = [0, 0, 0], sizes = [2, 16, 32], strides = [1, 1, 1]} : vector<2x16x128xf32> to vector<2x16x32xf32>
    %42 = arith.truncf %41 : vector<2x16x32xf32> to vector<2x16x32xbf16>
    %43 = tpu.concatenate %2, %42, %2 in 1 : vector<2x1x32xbf16>, vector<2x16x32xbf16>, vector<2x1x32xbf16> -> vector<2x18x32xbf16>
    %44 = vector.extract_strided_slice %43 {offsets = [0, 0, 0], sizes = [2, 16, 32], strides = [1, 1, 1]} : vector<2x18x32xbf16> to vector<2x16x32xbf16>
    %45 = vector.extract_strided_slice %43 {offsets = [0, 1, 0], sizes = [2, 16, 32], strides = [1, 1, 1]} : vector<2x18x32xbf16> to vector<2x16x32xbf16>
    %46 = vector.extract_strided_slice %43 {offsets = [0, 2, 0], sizes = [2, 16, 32], strides = [1, 1, 1]} : vector<2x18x32xbf16> to vector<2x16x32xbf16>
    %47 = tpu.concatenate %44, %45, %46, %4 in 2 : vector<2x16x32xbf16>, vector<2x16x32xbf16>, vector<2x16x32xbf16>, vector<2x16x32xbf16> -> vector<2x16x128xbf16>
    %48 = vector.shape_cast %47 : vector<2x16x128xbf16> to vector<32x128xbf16>
    %c0_17 = arith.constant 0 : index
    %c0_18 = arith.constant 0 : index
    %49 = vector.load %arg7[%c0_17, %c0_18] : memref<128x128xbf16, #tpu.memory_space<vmem>>, vector<128x128xbf16>
    %cst_19 = arith.constant dense<0.000000e+00> : vector<32x128xf32>
    %50 = tpu.matmul %48, %49, %cst_19 {dimension_numbers = #tpu.dot_dimension_numbers<[1], [0], [0], [1], [0, 0, 1, 1], [], []>} : vector<32x128xbf16>, vector<128x128xbf16>, vector<32x128xf32> -> vector<32x128xf32>
    %51 = vector.shape_cast %50 : vector<32x128xf32> to vector<2x16x128xf32>
    %c0_20 = arith.constant 0 : index
    %c0_21 = arith.constant 0 : index
    %52 = vector.load %arg8[%c0_20, %c0_21] : memref<1x128xf32, #tpu.memory_space<vmem>>, vector<1x128xf32>
    %53 = vector.shape_cast %52 : vector<1x128xf32> to vector<1x1x128xf32>
    %54 = vector.broadcast %53 : vector<1x1x128xf32> to vector<2x16x128xf32>
    %55 = arith.addf %51, %54 : vector<2x16x128xf32>
    %cst_22 = arith.constant 0.000000e+00 : f32
    %56 = vector.broadcast %cst_22 : f32 to vector<2x16x128xf32>
    %57 = arith.maximumf %55, %56 : vector<2x16x128xf32>
    %58 = vector.extract_strided_slice %57 {offsets = [0, 0, 0], sizes = [2, 16, 64], strides = [1, 1, 1]} : vector<2x16x128xf32> to vector<2x16x64xf32>
    %59 = arith.truncf %58 : vector<2x16x64xf32> to vector<2x16x64xbf16>
    %60 = tpu.concatenate %3, %59, %3 in 1 : vector<2x1x64xbf16>, vector<2x16x64xbf16>, vector<2x1x64xbf16> -> vector<2x18x64xbf16>
    %61 = vector.extract_strided_slice %60 {offsets = [0, 0, 0], sizes = [2, 16, 64], strides = [1, 1, 1]} : vector<2x18x64xbf16> to vector<2x16x64xbf16>
    %62 = vector.extract_strided_slice %60 {offsets = [0, 1, 0], sizes = [2, 16, 64], strides = [1, 1, 1]} : vector<2x18x64xbf16> to vector<2x16x64xbf16>
    %63 = vector.extract_strided_slice %60 {offsets = [0, 2, 0], sizes = [2, 16, 64], strides = [1, 1, 1]} : vector<2x18x64xbf16> to vector<2x16x64xbf16>
    %64 = tpu.concatenate %61, %62, %63, %5 in 2 : vector<2x16x64xbf16>, vector<2x16x64xbf16>, vector<2x16x64xbf16>, vector<2x16x64xbf16> -> vector<2x16x256xbf16>
    %65 = vector.shape_cast %64 : vector<2x16x256xbf16> to vector<32x256xbf16>
    %c0_23 = arith.constant 0 : index
    %c0_24 = arith.constant 0 : index
    %66 = vector.load %arg9[%c0_23, %c0_24] : memref<256x128xbf16, #tpu.memory_space<vmem>>, vector<256x128xbf16>
    %cst_25 = arith.constant dense<0.000000e+00> : vector<32x128xf32>
    %67 = tpu.matmul %65, %66, %cst_25 {dimension_numbers = #tpu.dot_dimension_numbers<[1], [0], [0], [1], [0, 0, 1, 1], [], []>} : vector<32x256xbf16>, vector<256x128xbf16>, vector<32x128xf32> -> vector<32x128xf32>
    %68 = vector.shape_cast %67 : vector<32x128xf32> to vector<2x16x128xf32>
    %c0_26 = arith.constant 0 : index
    %c0_27 = arith.constant 0 : index
    %69 = vector.load %arg10[%c0_26, %c0_27] : memref<1x128xf32, #tpu.memory_space<vmem>>, vector<1x128xf32>
    %70 = vector.shape_cast %69 : vector<1x128xf32> to vector<1x1x128xf32>
    %71 = vector.broadcast %70 : vector<1x1x128xf32> to vector<2x16x128xf32>
    %72 = arith.addf %68, %71 : vector<2x16x128xf32>
    %cst_28 = arith.constant 0.000000e+00 : f32
    %73 = vector.broadcast %cst_28 : f32 to vector<2x16x128xf32>
    %74 = arith.maximumf %72, %73 : vector<2x16x128xf32>
    %75 = arith.addf %1, %74 : vector<2x16x128xf32>
    %76 = vector.shape_cast %75 : vector<2x16x128xf32> to vector<32x128xf32>
    %77 = arith.truncf %76 : vector<32x128xf32> to vector<32x128xbf16>
    %c0_29 = arith.constant 0 : index
    %c0_30 = arith.constant 0 : index
    %78 = vector.load %arg11[%c0_29, %c0_30] : memref<128x128xbf16, #tpu.memory_space<vmem>>, vector<128x128xbf16>
    %cst_31 = arith.constant dense<0.000000e+00> : vector<32x128xf32>
    %79 = tpu.matmul %77, %78, %cst_31 {dimension_numbers = #tpu.dot_dimension_numbers<[1], [0], [0], [1], [0, 0, 1, 1], [], []>} : vector<32x128xbf16>, vector<128x128xbf16>, vector<32x128xf32> -> vector<32x128xf32>
    %80 = vector.shape_cast %79 : vector<32x128xf32> to vector<2x16x128xf32>
    %c0_32 = arith.constant 0 : index
    %c0_33 = arith.constant 0 : index
    %81 = vector.load %arg12[%c0_32, %c0_33] : memref<1x128xf32, #tpu.memory_space<vmem>>, vector<1x128xf32>
    %82 = vector.shape_cast %81 : vector<1x128xf32> to vector<1x1x128xf32>
    %83 = vector.broadcast %82 : vector<1x1x128xf32> to vector<2x16x128xf32>
    %84 = arith.addf %80, %83 : vector<2x16x128xf32>
    %c0_34 = arith.constant 0 : index
    %c0_35 = arith.constant 0 : index
    %c0_36 = arith.constant 0 : index
    %85 = vector.load %arg2[%c0_34, %c0_35, %c0_36] : memref<2x16x1xf32, #tpu.memory_space<vmem>>, vector<2x16x1xf32>
    %cst_37 = arith.constant 5.000000e-01 : f32
    %86 = vector.broadcast %cst_37 : f32 to vector<2x16x1xf32>
    %87 = arith.cmpf ogt, %85, %86 : vector<2x16x1xf32>
    %cst_38 = arith.constant 0.000000e+00 : f32
    %88 = vector.shape_cast %87 : vector<2x16x1xi1> to vector<2x16x1xi1>
    %89 = vector.broadcast %88 : vector<2x16x1xi1> to vector<2x16x128xi1>
    %90 = vector.broadcast %cst_38 : f32 to vector<2x16x128xf32>
    %91 = arith.select %89, %90, %84 : vector<2x16x128xi1>, vector<2x16x128xf32>
    %92 = arith.truncf %91 : vector<2x16x128xf32> to vector<2x16x128xbf16>
    %c0_39 = arith.constant 0 : index
    %c0_40 = arith.constant 0 : index
    %c0_41 = arith.constant 0 : index
    %93 = vector.load %arg13[%c0_39, %c0_40, %c0_41] : memref<2x16x128xbf16, #tpu.memory_space<vmem>>, vector<2x16x128xbf16>
    tpu.vector_store %arg13[%c0_39, %c0_40, %c0_41], %92 {strides = array<i32>} : memref<2x16x128xbf16, #tpu.memory_space<vmem>>, vector<2x16x128xbf16>,
    return
  }
  func.func @transform_0(%arg0: i32) -> (i32, i32, i32) {
    %c0_i32 = arith.constant 0 : i32
    %c0_i32_0 = arith.constant 0 : i32
    %c0_i32_1 = arith.constant 0 : i32
    return %arg0, %c0_i32, %c0_i32_0 : i32, i32, i32
  }
  func.func @transform_1(%arg0: i32) -> (i32, i32, i32) {
    %c0_i32 = arith.constant 0 : i32
    %c0_i32_0 = arith.constant 0 : i32
    %c0_i32_1 = arith.constant 0 : i32
    return %arg0, %c0_i32, %c0_i32_0 : i32, i32, i32
  }
  func.func @transform_2(%arg0: i32) -> (i32, i32) {
    %c0_i32 = arith.constant 0 : i32
    %c0_i32_0 = arith.constant 0 : i32
    %c0_i32_1 = arith.constant 0 : i32
    return %c0_i32, %c0_i32_0 : i32, i32
  }
  func.func @transform_3(%arg0: i32) -> (i32, i32) {
    %c0_i32 = arith.constant 0 : i32
    %c0_i32_0 = arith.constant 0 : i32
    %c0_i32_1 = arith.constant 0 : i32
    return %c0_i32, %c0_i32_0 : i32, i32
  }
  func.func @transform_4(%arg0: i32) -> (i32, i32) {
    %c0_i32 = arith.constant 0 : i32
    %c0_i32_0 = arith.constant 0 : i32
    %c0_i32_1 = arith.constant 0 : i32
    return %c0_i32, %c0_i32_0 : i32, i32
  }
  func.func @transform_5(%arg0: i32) -> (i32, i32) {
    %c0_i32 = arith.constant 0 : i32
    %c0_i32_0 = arith.constant 0 : i32
    %c0_i32_1 = arith.constant 0 : i32
    return %c0_i32, %c0_i32_0 : i32, i32
  }
  func.func @transform_6(%arg0: i32) -> (i32, i32) {
    %c0_i32 = arith.constant 0 : i32
    %c0_i32_0 = arith.constant 0 : i32
    %c0_i32_1 = arith.constant 0 : i32
    return %c0_i32, %c0_i32_0 : i32, i32
  }
  func.func @transform_7(%arg0: i32) -> (i32, i32) {
    %c0_i32 = arith.constant 0 : i32
    %c0_i32_0 = arith.constant 0 : i32
    %c0_i32_1 = arith.constant 0 : i32
    return %c0_i32, %c0_i32_0 : i32, i32
  }
  func.func @transform_8(%arg0: i32) -> (i32, i32) {
    %c0_i32 = arith.constant 0 : i32
    %c0_i32_0 = arith.constant 0 : i32
    %c0_i32_1 = arith.constant 0 : i32
    return %c0_i32, %c0_i32_0 : i32, i32
  }
  func.func @transform_9(%arg0: i32) -> (i32, i32) {
    %c0_i32 = arith.constant 0 : i32
    %c0_i32_0 = arith.constant 0 : i32
    %c0_i32_1 = arith.constant 0 : i32
    return %c0_i32, %c0_i32_0 : i32, i32
  }
  func.func @transform_10(%arg0: i32) -> (i32, i32) {
    %c0_i32 = arith.constant 0 : i32
    %c0_i32_0 = arith.constant 0 : i32
    %c0_i32_1 = arith.constant 0 : i32
    return %c0_i32, %c0_i32_0 : i32, i32
  }
  func.func @transform_11(%arg0: i32) -> (i32, i32) {
    %c0_i32 = arith.constant 0 : i32
    %c0_i32_0 = arith.constant 0 : i32
    %c0_i32_1 = arith.constant 0 : i32
    return %c0_i32, %c0_i32_0 : i32, i32
  }
  func.func @transform_12(%arg0: i32) -> (i32, i32, i32) {
    %c0_i32 = arith.constant 0 : i32
    %c0_i32_0 = arith.constant 0 : i32
    %c0_i32_1 = arith.constant 0 : i32
    return %arg0, %c0_i32, %c0_i32_0 : i32, i32, i32
  }
}

</mosaic_0001>

<bundles_post_ra>
// kernel: tpu_custom_call.1
= control target key start
LH: loop header
LB: loop body
LE: loop exit
PB: predicated region body
PF: predicated region fallthrough
CT: control target
= control target key end

     0   :  { %17 = vsyncpa [#allocation3], 0  ;;  %s2067_s0 = inlined_call_operand.hbm [shape: bf16[2,16,128], index: 0, kind: input, shape index: {}]   ;;  %s2068_s1 = inlined_call_operand.vmem [shape: f32[2,16,1], index: 1, kind: input, shape index: {}]   ;;  %s2069_s2 = inlined_call_operand.hbm [shape: bf16[128,128], index: 2, kind: input, shape index: {}]   ;;  %s2070_s3 = inlined_call_operand.vmem [shape: f32[1,128], index: 3, kind: input, shape index: {}]   ;;  %s2071_s4 = inlined_call_operand.hbm [shape: bf16[256,128], index: 4, kind: input, shape index: {}]   ;;  %s2072_s5 = inlined_call_operand.vmem [shape: f32[1,128], index: 5, kind: input, shape index: {}]   ;;  %s2073_s6 = inlined_call_operand.hbm [shape: bf16[128,128], index: 6, kind: input, shape index: {}]   ;;  %s2074_s7 = inlined_call_operand.vmem [shape: f32[1,128], index: 7, kind: input, shape index: {}]   ;;  %s2075_s8 = inlined_call_operand.hbm [shape: bf16[256,128], index: 8, kind: input, shape index: {}]   ;;  %s2076_s9 = inlined_call_operand.vmem [shape: f32[1,128], index: 9, kind: input, shape index: {}]   ;;  %s2077_s10 = inlined_call_operand.vmem [shape: bf16[128,128], index: 10, kind: input, shape index: {}]   ;;  %s2078_s11 = inlined_call_operand.vmem [shape: f32[1,128], index: 11, kind: input, shape index: {}]   ;;  %s2079_s12 = inlined_call_operand.hbm [shape: bf16[2,16,128], index: 12, kind: output, shape index: {}]  }
   0x1   :  { %18 = vsyncpa [#allocation6], 0 }
   0x2   :  { %19 = vsyncpa [#allocation9], 0 }
   0x3   :  { %20 = vsyncpa [#allocation4], 0  ;;  %s1725_s21 = smov [#allocation5]   ;;  %s1726_s23 = smov [#allocation8]  }
   0x4   :  { %s40_s22 = sshll.u32 %s1725_s21, 4  ;;  %s68_s24 = sshll.u32 %s1726_s23, 4  ;;  %s41_s22 = int_to_ptr.vmem [resolvable:$true] %s40_s22  ;;  %s1800_s24 = int_to_ptr.vmem [resolvable:$true] %s68_s24 }
   0x5   :  { %s1585_s27 = scalar_lea.hbm %s2069_s2, 1024 }
   0x6   :  { %p1586_p0 = scmp.ne.s32.totalorder %s2069_s2, %s1585_s27  ;;  %p1589_p1 = scmp.lt.u32.totalorder %s1585_s27, %s2069_s2 }
   0x8   :  { %p1591_p2 = pnand %p1589_p1, %p1586_p0 }
   0xa   :  { %1594 = shalt.err (!%p1591_p2)
}
   0xb   :  { %s1595_s14 = scalar_lea.vmem %s41_s22, 1024  ;;  %p1600_p4 = scmp.lt.s32.totalorder %s41_s22, %s41_s22 }
   0xc   :  { %p1596_p3 = scmp.ne.s32.totalorder %s41_s22, %s1595_s14  ;;  %p1601_p5 = scmp.lt.s32.totalorder %s1595_s14, %s1595_s14 }
   0xe   :  { %p1602_p6 = por %p1601_p5, %p1600_p4 }
  0x10   :  { %p1603_p7 = pnand %p1602_p6, %p1596_p3 }
  0x12   :  { %1606 = shalt.err (!%p1603_p7)
}
  0x13   :  { %s1727_s15 = smov 64   ;;  %s1728_s16 = smov 4  }
  0x14   :  { %46 = dma.hbm_to_vmem [thread:$0]  %s2069_s2, 1024, %s41_s22, [#allocation6], %s1727_s15, %s1727_s15, %s1728_s16  }
  0x15   :  { %s1607_s21 = scalar_lea.hbm %s2073_s6, 1024 }
  0x16   :  { %p1608_p8 = scmp.ne.s32.totalorder %s2073_s6, %s1607_s21  ;;  %p1611_p9 = scmp.lt.u32.totalorder %s1607_s21, %s2073_s6 }
  0x18   :  { %p1613_p10 = pnand %p1611_p9, %p1608_p8 }
  0x1a   :  { %1616 = shalt.err (!%p1613_p10)
}
  0x1b   :  { %s1617_s28 = scalar_lea.vmem %s1800_s24, 1024  ;;  %p1622_p12 = scmp.lt.s32.totalorder %s1800_s24, %s1800_s24 }
  0x1c   :  { %p1618_p11 = scmp.ne.s32.totalorder %s1800_s24, %s1617_s28  ;;  %p1623_p13 = scmp.lt.s32.totalorder %s1617_s28, %s1617_s28 }
  0x1e   :  { %p1624_p0 = por %p1623_p13, %p1622_p12 }
  0x20   :  { %p1625_p1 = pnand %p1624_p0, %p1618_p11 }
  0x22   :  { %1628 = shalt.err (!%p1625_p1)
}
  0x23   :  { %74 = dma.hbm_to_vmem [thread:$0]  %s2073_s6, 1024, %s1800_s24, [#allocation9], %s1727_s15, %s1727_s15, %s1728_s16  }
  0x24   :  { %s1729_s29 = smov [#allocation2]   ;;  %s1730_s13 = smov [#allocation7]  }
  0x25   :  { %s26_s30 = sshll.u32 %s1729_s29, 4  ;;  %s54_s14 = sshll.u32 %s1730_s13, 4  ;;  %s27_s30 = int_to_ptr.vmem [resolvable:$true] %s26_s30  ;;  %s1837_s14 = int_to_ptr.vmem [resolvable:$true] %s54_s14 }
  0x26   :  { %s1629_s19 = scalar_lea.hbm %s2067_s0, 256 }
  0x27   :  { %p1630_p2 = scmp.ne.s32.totalorder %s2067_s0, %s1629_s19  ;;  %p1633_p3 = scmp.lt.u32.totalorder %s1629_s19, %s2067_s0 }
  0x29   :  { %p1635_p4 = pnand %p1633_p3, %p1630_p2 }
  0x2b   :  { %1638 = shalt.err (!%p1635_p4)
}
  0x2c   :  { %s1639_s6 = scalar_lea.vmem %s27_s30, 256  ;;  %p1644_p6 = scmp.lt.s32.totalorder %s27_s30, %s27_s30 }
  0x2d   :  { %p1640_p5 = scmp.ne.s32.totalorder %s27_s30, %s1639_s6  ;;  %p1645_p7 = scmp.lt.s32.totalorder %s1639_s6, %s1639_s6 }
  0x2f   :  { %p1646_p8 = por %p1645_p7, %p1644_p6 }
  0x31   :  { %p1647_p9 = pnand %p1646_p8, %p1640_p5 }
  0x33   :  { %1650 = shalt.err (!%p1647_p9)
}
  0x34   :  { %32 = dma.hbm_to_vmem [thread:$0]  %s2067_s0, 256, %s27_s30, [#allocation3], %s1727_s15, %s1727_s15, %s1728_s16  }
  0x35   :  { %s1651_s2 = scalar_lea.hbm %s2071_s4, 2048 }
  0x36   :  { %p1652_p10 = scmp.ne.s32.totalorder %s2071_s4, %s1651_s2  ;;  %p1655_p11 = scmp.lt.u32.totalorder %s1651_s2, %s2071_s4 }
  0x38   :  { %p1657_p12 = pnand %p1655_p11, %p1652_p10 }
  0x3a   :  { %1660 = shalt.err (!%p1657_p12)
}
  0x3b   :  { %s1661_s18 = scalar_lea.vmem %s1837_s14, 2048  ;;  %p1666_p0 = scmp.lt.s32.totalorder %s1837_s14, %s1837_s14 }
  0x3c   :  { %p1662_p13 = scmp.ne.s32.totalorder %s1837_s14, %s1661_s18  ;;  %p1667_p1 = scmp.lt.s32.totalorder %s1661_s18, %s1661_s18 }
  0x3e   :  { %p1668_p2 = por %p1667_p1, %p1666_p0 }
  0x40   :  { %p1669_p3 = pnand %p1668_p2, %p1662_p13 }
  0x42   :  { %1672 = shalt.err (!%p1669_p3)
}
  0x43   :  { %60 = dma.hbm_to_vmem [thread:$0]  %s2071_s4, 2048, %s1837_s14, [#allocation6], %s1727_s15, %s1727_s15, %s1728_s16  }
  0x44   :  { %s1731_s19 = smov [#allocation10]   ;;  %s1673_s25 = scalar_lea.hbm %s2075_s8, 2048 }
  0x45   :  { %s82_s20 = sshll.u32 %s1731_s19, 4  ;;  %p1674_p4 = scmp.ne.s32.totalorder %s2075_s8, %s1673_s25  ;;  %s83_s20 = int_to_ptr.vmem [resolvable:$true] %s82_s20 }
  0x46   :  { %p1677_p5 = scmp.lt.u32.totalorder %s1673_s25, %s2075_s8 }
  0x48   :  { %p1679_p6 = pnand %p1677_p5, %p1674_p4 }
  0x4a   :  { %1682 = shalt.err (!%p1679_p6)
}
  0x4b   :  { %s1683_s28 = scalar_lea.vmem %s83_s20, 2048  ;;  %p1688_p8 = scmp.lt.s32.totalorder %s83_s20, %s83_s20 }
  0x4c   :  { %p1684_p7 = scmp.ne.s32.totalorder %s83_s20, %s1683_s28  ;;  %p1689_p9 = scmp.lt.s32.totalorder %s1683_s28, %s1683_s28 }
  0x4e   :  { %p1690_p10 = por %p1689_p9, %p1688_p8 }
  0x50   :  { %p1691_p11 = pnand %p1690_p10, %p1684_p7 }
  0x52   :  { %1694 = shalt.err (!%p1691_p11)
}
  0x53   :  { %88 = dma.hbm_to_vmem [thread:$0]  %s2075_s8, 2048, %s83_s20, [#allocation9], %s1727_s15, %s1727_s15, %s1728_s16  }
  0x54   :  { %1717 = dma.done.wait [#allocation3], 256  }
  0x55   :  { %1718 = vsyncadd [#allocation3], 4294967040 }
  0x56   :  { %1719 = dma.done.wait [#allocation6], 3072  }
  0x57   :  { %1720 = vsyncadd [#allocation6], 4294964224 }
  0x58   :  { %1721 = dma.done.wait [#allocation9], 3072  }
  0x59   :  { %1722 = vsyncadd [#allocation9], 4294964224  ;;  %v1889_v0 = vld [vmem:[#allocation2] sm:$0xff]   ;;  %vm140_vm0 = vsmask.f32 256  ;;  %v1891_v1 = vld [vmem:[#allocation2 + $0x8] sm:$0xff]  }
  0x5a   :  { %v1527_v2 = vld [vmem:[#allocation5] sm:$0xff]   ;;  %vm139_vm1 = vcmask 1040384   ;;  %v1528_v3 = vld [vmem:[#allocation5 + $0x8] sm:$0xff]   ;;  %v122_v4 = vshrl.u32 %v1889_v0, 16  ;;  %v125_v5 = vshll.u32 %v1889_v0, 16  ;;  %v129_v6 = vshrl.u32 %v1891_v1, 16 }
  0x5b   :  { %v132_v7 = vshll.u32 %v1891_v1, 16  ;;  %1453 = vmatprep.subr.bf16.mxu0 %v1527_v2  ;;  %vm1897_vm2 = vmand %vm139_vm1, %vm140_vm0  ;;  %vm146_vm3 = vsmask.f32 7424  ;;  %vm179_vm4 = vcmask 1046528   ;;  %v1529_v11 = vld [vmem:[#allocation5 + $0x10] sm:$0xff]   ;;  %v1530_v19 = vld [vmem:[#allocation5 + $0x18] sm:$0xff]  }
  0x5c   :  { %1454 = vmatpush3.bf16.msra.mxu0 %v1527_v2  ;;  %v124_v8 = vrot.slane %v122_v4, 7  ;;  %v131_v10 = vrot.slane %v129_v6, 7  ;;  %v1531_v32 = vld [vmem:[#allocation5 + $0x20] sm:$0xff]   ;;  %v1532_v38 = vld [vmem:[#allocation5 + $0x28] sm:$0xff]   ;;  %s1732_s8 = smov 32   ;;  %v1533_v41 = vld [vmem:[#allocation5 + $0x30] sm:$0xff]  }
  0x5d   :  { %1455 = vmatprep.subr.bf16.mxu0 %v1528_v3  ;;  %v1534_v42 = vld [vmem:[#allocation5 + $0x38] sm:$0xff]   ;;  %vm190_vm5 = vcmask 261120   ;;  %vm195_vm6 = vcmask 523264   ;;  %vm200_vm7 = vcmask 785408   ;;  %v1535_v51 = vld [vmem:[#allocation7 + $0x40] sm:$0xff]   ;;  %v1537_v53 = vld [vmem:[#allocation7 + $0x48] sm:$0xff]  }
  0x5e   :  { %v127_v12 = vor.u32 %v125_v5, %v124_v8  ;;  %v144_v13 = vsel %vm1897_vm2, %v124_v8, 0  ;;  %v134_v14 = vor.u32 %v132_v7, %v131_v10  ;;  %v145_v15 = vsel %vm1897_vm2, %v131_v10, 0  ;;  %v1536_v52 = vld [vmem:[#allocation7] sm:$0xff]   ;;  %1377 = vmatprep.subr.bf16.mxu1 %v1535_v51  ;;  %v1538_v54 = vld [vmem:[#allocation7 + $0x8] sm:$0xff]   ;;  %v1539_v55 = vld [vmem:[#allocation7 + $0x50] sm:$0xff]   ;;  %s1734_s17 = smov [#allocation11]  }
  0x5f   :  { %v155_v16 = vshll.u32 %v144_v13, 16  ;;  %v181_v17 = vrot.slane %v144_v13, 1  ;;  %v167_v18 = vshll.u32 %v145_v15, 16  ;;  %v184_v25 = vrot.slane %v145_v15, 1  ;;  %1378 = vmatpush3.bf16.msra.mxu1 %v1536_v52  ;;  %v1540_v56 = vld [vmem:[#allocation7 + $0x10] sm:$0xff]   ;;  %v1541_v57 = vld [vmem:[#allocation7 + $0x58] sm:$0xff]  }
  0x60   :  { %1456 = vmatpush3.bf16.msra.mxu0 %v1528_v3  ;;  %v142_v20 = vsel %vm1897_vm2, 0, %v127_v12  ;;  %v143_v21 = vsel %vm1897_vm2, 0, %v134_v14  ;;  %1379 = vmatprep.subr.bf16.mxu1 %v1537_v53  ;;  %v1542_v58 = vld [vmem:[#allocation7 + $0x18] sm:$0xff]   ;;  %v1543_v59 = vld [vmem:[#allocation7 + $0x60] sm:$0xff]   ;;  %v1545_v61 = vld [vmem:[#allocation7 + $0x68] sm:$0xff]   ;;  %s1263_s18 = sshll.u32 %s1734_s17, 4  ;;  %s1264_s18 = int_to_ptr.vmem [resolvable:$true] %s1263_s18 }
  0x61   :  { %1457 = vmatprep.subr.bf16.mxu0 %v1529_v11  ;;  %v148_v22 = vshrl.u32 %v142_v20, 16  ;;  %v150_v23 = vshll.u32 %v142_v20, 16  ;;  %v180_v24 = vrot.slane %v142_v20, 1  ;;  %v160_v26 = vshrl.u32 %v143_v21, 16  ;;  %v1544_v60 = vld [vmem:[#allocation7 + $0x20] sm:$0xff]   ;;  %v1546_v62 = vld [vmem:[#allocation7 + $0x28] sm:$0xff]   ;;  %p1700_p13 = scmp.lt.s32.totalorder %s1264_s18, %s1264_s18 }
  0x62   :  { %v162_v27 = vshll.u32 %v143_v21, 16  ;;  %v183_v28 = vrot.slane %v143_v21, 1  ;;  %v157_v30 = vrot.slane %v155_v16, 1  ;;  %v169_v34 = vrot.slane %v167_v18, 1  ;;  %v1547_v63 = vld [vmem:[#allocation7 + $0x70] sm:$0xff]   ;;  %v1549_v3 = vld [vmem:[#allocation7 + $0x78] sm:$0xff]  }
  0x63   :  { %v152_v29 = vrot.slane %v150_v23, 1  ;;  %v182_v31 = vsel %vm179_vm4, %v180_v24, %v181_v17  ;;  %1380 = vmatpush3.bf16.msra.mxu1 %v1538_v54  ;;  %v1548_v2 = vld [vmem:[#allocation7 + $0x30] sm:$0xff]   ;;  %v1550_v4 = vld [vmem:[#allocation7 + $0x38] sm:$0xff]  }
  0x64   :  { %1458 = vmatpush3.bf16.msra.mxu0 %v1529_v11  ;;  %186 = vrot.lane.b32.xlu1 %v182_v31, %s1727_s15  ;;  %v164_v33 = vrot.slane %v162_v27, 1  ;;  %v185_v36 = vsel %vm179_vm4, %v183_v28, %v184_v25  ;;  %v1289_v5 = vld [vmem:[%s2070_s3] ss:$0 sm:$0xff] }
  0x65   :  { %1459 = vmatprep.subr.bf16.mxu0 %v1530_v19  ;;  %v153_v35 = vor.u32 %v152_v29, %v148_v22  ;;  %1381 = vmatprep.subr.bf16.mxu1 %v1539_v55  ;;  %v1575_v9 = vld [vmem:[%s2077_s10] sm:$0xff]  }
  0x66   :  { %v165_v37 = vor.u32 %v164_v33, %v160_v26 }
  0x67   :  { %v158_v39 = vsel %vm146_vm3, %v153_v35, %v157_v30  ;;  %1382 = vmatpush3.bf16.msra.mxu1 %v1540_v56 }
  0x68   :  { %1460 = vmatpush3.bf16.msra.mxu0 %v1530_v19  ;;  %171 = vrot.lane.b32.xlu0 %v158_v39, %s1732_s8  ;;  %v170_v40 = vsel %vm146_vm3, %v165_v37, %v169_v34 }
  0x69   :  { %188 = vrot.lane.b32.xlu1 %v185_v36, %s1727_s15  ;;  %1461 = vmatprep.subr.bf16.mxu0 %v1531_v32 }
  0x6a   :  { %1383 = vmatprep.subr.bf16.mxu1 %v1541_v57  ;;  %v1551_v57 = vld [vmem:[#allocation8] sm:$0xff]  }
  0x6b   :  { %1384 = vmatpush3.bf16.msra.mxu1 %v1542_v58  ;;  %v1552_v58 = vld [vmem:[#allocation8 + $0x8] sm:$0xff]  }
  0x6c   :  { %1462 = vmatpush3.bf16.msra.mxu0 %v1531_v32  ;;  %173 = vrot.lane.b32.xlu0 %v170_v40, %s1732_s8 }
  0x6d   :  { %1463 = vmatprep.subr.bf16.mxu0 %v1532_v38  ;;  %1385 = vmatprep.subr.bf16.mxu1 %v1543_v59  ;;  %v1553_v59 = vld [vmem:[#allocation8 + $0x10] sm:$0xff]  }
  0x6f   :  { %1386 = vmatpush3.bf16.msra.mxu1 %v1544_v60  ;;  %v1554_v60 = vld [vmem:[#allocation8 + $0x18] sm:$0xff]  }
  0x70   :  { %1464 = vmatpush3.bf16.msra.mxu0 %v1532_v38  ;;  %1387 = vmatprep.subr.bf16.mxu1 %v1545_v61  ;;  %v1555_v61 = vld [vmem:[#allocation8 + $0x20] sm:$0xff]  }
  0x71   :  { %1465 = vmatprep.subr.bf16.mxu0 %v1533_v41 }
  0x73   :  { %1388 = vmatpush3.bf16.msra.mxu1 %v1546_v62 }
  0x74   :  { %1466 = vmatpush3.bf16.msra.mxu0 %v1533_v41  ;;  %1389 = vmatprep.subr.bf16.mxu1 %v1547_v63 }
  0x75   :  { %1467 = vmatprep.subr.bf16.mxu0 %v1534_v42 }
  0x77   :  { %1390 = vmatpush3.bf16.msra.mxu1 %v1548_v2  ;;  %v1308_v2 = vld [vmem:[%s2072_s5] ss:$0 sm:$0xff] }
  0x78   :  { %1468 = vmatpush3.bf16.msra.mxu0 %v1534_v42  ;;  %1391 = vmatprep.subr.bf16.mxu1 %v1549_v3 }
  0x79   :  { %1473 = vmatprep.subr.bf16.mxu0 %v1551_v57 }
  0x7b   :  { %1392 = vmatpush3.bf16.msra.mxu1 %v1550_v4 }
  0xd6   :  { %v187_v43 = vpop.permute.xlu1 %186 }
  0xda   :  { %v172_v44 = vpop.permute.xlu0 %171 }
  0xdb   :  { %v192_v45 = vsel %vm190_vm5, %v142_v20, %v172_v44  ;;  %v189_v47 = vpop.permute.xlu1 %188 }
  0xdc   :  { %v197_v46 = vsel %vm195_vm6, %v192_v45, %v187_v43 }
  0xdd   :  { %1469 = vmatprep.mubr.msk.bf16.mxu0 %vm200_vm7, %v197_v46 }
  0xde   :  { %v174_v48 = vpop.permute.xlu0 %173 }
  0xdf   :  { %v194_v49 = vsel %vm190_vm5, %v143_v21, %v174_v48 }
  0xe0   :  { %v199_v50 = vsel %vm195_vm6, %v194_v49, %v189_v47 }
  0xe1   :  { %1470 = vmatmul.mubr.msk.bf16.vlgmr.msra.gmra.mrb[0].mxu0 %vm200_vm7, %v199_v50 }
  0xe2   :  { %1474 = vmatpush3.bf16.msra.mxu0 %v1551_v57 }
  0xe3   :  { %1475 = vmatprep.subr.bf16.mxu0 %v1552_v58 }
  0xe6   :  { %1476 = vmatpush3.bf16.msra.mxu0 %v1552_v58 }
  0xe7   :  { %1477 = vmatprep.subr.bf16.mxu0 %v1553_v59 }
  0xea   :  { %1478 = vmatpush3.bf16.msra.mxu0 %v1553_v59 }
  0xeb   :  { %1479 = vmatprep.subr.bf16.mxu0 %v1554_v60 }
  0xee   :  { %1480 = vmatpush3.bf16.msra.mxu0 %v1554_v60 }
  0xef   :  { %1481 = vmatprep.subr.bf16.mxu0 %v1555_v61 }
  0xf2   :  { %1482 = vmatpush3.bf16.msra.mxu0 %v1555_v61 }
 0x1b4   :  { %v1471_v6 = vpop.f32.mrb[0].mxu0 }
 0x1b5   :  { %v328_v7 = vadd.f32 %v1471_v6, %v1289_v5  ;;  %v304_v8 = vpop.f32.mrb[1].mxu0 }
 0x1b6   :  { %v326_v10 = vadd.f32 %v1289_v5, %v304_v8  ;;  %v1472_v11 = vpop.f32.mrb[2].mxu0  ;;  %v115_v8 = vunpack.c.l.bf16 %v1889_v0 }
 0x1b7   :  { %v329_v12 = vadd.f32 %v1472_v11, %v1289_v5  ;;  %v307_v13 = vpop.f32.mrb[3].mxu0  ;;  %v332_v15 = vmax.f32 %v328_v7, 0.0  ;;  %v116_v11 = vunpack.c.h.bf16 %v1889_v0 }
 0x1b8   :  { %v327_v14 = vadd.f32 %v1289_v5, %v307_v13  ;;  %v330_v17 = vmax.f32 %v326_v10, 0.0 }
 0x1b9   :  { %v333_v16 = vmax.f32 %v329_v12, 0.0 }
 0x1ba   :  { %v331_v18 = vmax.f32 %v327_v14, 0.0 }
 0x1bb   :  { %v335_v19 = vpack.c.bf16 %v333_v16, %v332_v15 }
 0x1bc   :  { %v334_v20 = vpack.c.bf16 %v331_v18, %v330_v17 }
 0x1bd   :  { %v344_v21 = vshrl.u32 %v335_v19, 16  ;;  %v347_v24 = vshll.u32 %v335_v19, 16 }
 0x1be   :  { %v337_v22 = vshrl.u32 %v334_v20, 16  ;;  %v340_v26 = vshll.u32 %v334_v20, 16 }
 0x1bf   :  { %v346_v23 = vrot.slane %v344_v21, 7 }
 0x1c0   :  { %v339_v25 = vrot.slane %v337_v22, 7 }
 0x1c1   :  { %v349_v27 = vor.u32 %v347_v24, %v346_v23  ;;  %v357_v28 = vsel %vm1897_vm2, %v346_v23, 0  ;;  %v117_v24 = vunpack.c.l.bf16 %v1891_v1 }
 0x1c2   :  { %v342_v29 = vor.u32 %v340_v26, %v339_v25  ;;  %v356_v30 = vsel %vm1897_vm2, %v339_v25, 0  ;;  %v378_v34 = vshll.u32 %v357_v28, 16  ;;  %v394_v51 = vrot.slane %v357_v28, 1 }
 0x1c3   :  { %v355_v31 = vsel %vm1897_vm2, 0, %v349_v27  ;;  %v391_v36 = vrot.slane %v356_v30, 1  ;;  %v366_v38 = vshll.u32 %v356_v30, 16  ;;  %v118_v27 = vunpack.c.h.bf16 %v1891_v1 }
 0x1c4   :  { %v354_v32 = vsel %vm1897_vm2, 0, %v342_v29  ;;  %v373_v33 = vshll.u32 %v355_v31, 16  ;;  %v371_v39 = vshrl.u32 %v355_v31, 16  ;;  %v380_v45 = vrot.slane %v378_v34, 1  ;;  %v1556_v29 = vld [vmem:[#allocation8 + $0x28] sm:$0xff]  }
 0x1c5   :  { %v390_v35 = vrot.slane %v354_v32, 1  ;;  %v361_v37 = vshll.u32 %v354_v32, 16  ;;  %v359_v42 = vshrl.u32 %v354_v32, 16  ;;  %v368_v47 = vrot.slane %v366_v38, 1  ;;  %1483 = vmatprep.subr.bf16.mxu0 %v1556_v29 }
 0x1c6   :  { %v375_v40 = vrot.slane %v373_v33, 1  ;;  %v393_v50 = vrot.slane %v355_v31, 1  ;;  %1484 = vmatpush3.bf16.msra.mxu0 %v1556_v29  ;;  %v1570_v29 = vld [vmem:[#allocation10 + $0x28] sm:$0xff]  }
 0x1c7   :  { %v392_v41 = vsel %vm179_vm4, %v390_v35, %v391_v36  ;;  %v363_v43 = vrot.slane %v361_v37, 1  ;;  %v1557_v37 = vld [vmem:[#allocation8 + $0x30] sm:$0xff]  }
 0x1c8   :  { %1306 = vmatprep.mubr.msk.bf16.mxu1 %vm195_vm6, %v392_v41  ;;  %v376_v44 = vor.u32 %v375_v40, %v371_v39  ;;  %v395_v54 = vsel %vm179_vm4, %v393_v50, %v394_v51  ;;  %1485 = vmatprep.subr.bf16.mxu0 %v1557_v37 }
 0x1c9   :  { %v364_v46 = vor.u32 %v363_v43, %v359_v42 }
 0x1ca   :  { %v381_v48 = vsel %vm146_vm3, %v376_v44, %v380_v45  ;;  %1486 = vmatpush3.bf16.msra.mxu0 %v1557_v37  ;;  %v1558_v45 = vld [vmem:[#allocation8 + $0x38] sm:$0xff]  }
 0x1cb   :  { %384 = vrot.lane.b32.xlu1 %v381_v48, %s1727_s15  ;;  %v369_v49 = vsel %vm146_vm3, %v364_v46, %v368_v47  ;;  %1487 = vmatprep.subr.bf16.mxu0 %v1558_v45 }
 0x1cc   :  { %382 = vrot.lane.b32.xlu0 %v369_v49, %s1727_s15 }
 0x1ce   :  { %1488 = vmatpush3.bf16.msra.mxu0 %v1558_v45 }
 0x1cf   :  { %1493 = vmatprep.subr.bf16.mxu0 %v1575_v9 }
 0x23d   :  { %v385_v55 = vpop.permute.xlu1 %384 }
 0x23e   :  { %v383_v52 = vpop.permute.xlu0 %382  ;;  %v400_v56 = vsel %vm195_vm6, %v355_v31, %v385_v55 }
 0x23f   :  { %v397_v53 = vsel %vm195_vm6, %v354_v32, %v383_v52 }
 0x240   :  { %569 = vmatmul.mubr.bf16.vlgmr.msra.gmra.mrb[0].mxu1 %v397_v53 }
 0x241   :  { %1307 = vmatprep.mubr.msk.bf16.mxu1 %vm195_vm6, %v395_v54 }
 0x248   :  { %577 = vmatmul.mubr.bf16.gmra.mrb[4].mxu1 %v400_v56 }
 0x313   :  { %v1393_v62 = vpop.f32.mrb[0].mxu1 }
 0x314   :  { %v1394_v63 = vpop.f32.mrb[1].mxu1 }
 0x315   :  { %v1395_v3 = vadd.f32 %v1394_v63, %v1393_v62  ;;  %v1396_v4 = vpop.f32.mrb[2].mxu1 }
 0x316   :  { %v1397_v5 = vpop.f32.mrb[3].mxu1 }
 0x317   :  { %v592_v6 = vadd.f32 %v1395_v3, %v1308_v2  ;;  %v1398_v7 = vadd.f32 %v1397_v5, %v1396_v4 }
 0x319   :  { %v596_v10 = vmax.f32 %v592_v6, 0.0  ;;  %v593_v12 = vadd.f32 %v1398_v7, %v1308_v2 }
 0x31b   :  { %v597_v13 = vmax.f32 %v593_v12, 0.0  ;;  %v1399_v14 = vpop.f32.mrb[4].mxu1  ;;  %v600_v16 = vadd.f32 %v596_v10, %v115_v8 }
 0x31c   :  { %v1400_v15 = vpop.f32.mrb[5].mxu1 }
 0x31d   :  { %v601_v17 = vadd.f32 %v597_v13, %v116_v11  ;;  %v1401_v18 = vadd.f32 %v1400_v15, %v1399_v14  ;;  %v1402_v19 = vpop.f32.mrb[6].mxu1 }
 0x31e   :  { %v1403_v20 = vpop.f32.mrb[7].mxu1 }
 0x31f   :  { %v604_v21 = vpack.c.bf16 %v601_v17, %v600_v16  ;;  %v594_v22 = vadd.f32 %v1401_v18, %v1308_v2  ;;  %v1404_v23 = vadd.f32 %v1403_v20, %v1402_v19  ;;  %v1559_v16 = vld [vmem:[#allocation10 + $0x40] sm:$0xff]   ;;  %v1561_v18 = vld [vmem:[#allocation10 + $0x48] sm:$0xff]   ;;  %v1563_v20 = vld [vmem:[#allocation10 + $0x50] sm:$0xff]  }
 0x320   :  { %v1560_v17 = vld [vmem:[#allocation10] sm:$0xff]   ;;  %1415 = vmatprep.subr.bf16.mxu1 %v1559_v16  ;;  %v1562_v19 = vld [vmem:[#allocation10 + $0x8] sm:$0xff]  }
 0x321   :  { %v607_v25 = vshrl.u32 %v604_v21, 16  ;;  %v598_v26 = vmax.f32 %v594_v22, 0.0  ;;  %v595_v28 = vadd.f32 %v1404_v23, %v1308_v2  ;;  %v610_v31 = vshll.u32 %v604_v21, 16  ;;  %1416 = vmatpush3.bf16.msra.mxu1 %v1560_v17  ;;  %v1564_v21 = vld [vmem:[#allocation10 + $0x10] sm:$0xff]   ;;  %v1565_v22 = vld [vmem:[#allocation10 + $0x58] sm:$0xff]  }
 0x322   :  { %1417 = vmatprep.subr.bf16.mxu1 %v1561_v18  ;;  %v1566_v23 = vld [vmem:[#allocation10 + $0x18] sm:$0xff]  }
 0x323   :  { %v609_v30 = vrot.slane %v607_v25, 7  ;;  %v599_v32 = vmax.f32 %v595_v28, 0.0  ;;  %v602_v34 = vadd.f32 %v598_v26, %v117_v24  ;;  %v1567_v25 = vld [vmem:[#allocation10 + $0x60] sm:$0xff]   ;;  %v1569_v28 = vld [vmem:[#allocation10 + $0x68] sm:$0xff]  }
 0x324   :  { %v1568_v26 = vld [vmem:[#allocation10 + $0x20] sm:$0xff]  }
 0x325   :  { %v612_v33 = vor.u32 %v610_v31, %v609_v30  ;;  %v603_v35 = vadd.f32 %v599_v32, %v118_v27  ;;  %v626_v36 = vsel %vm1897_vm2, %v609_v30, 0  ;;  %1418 = vmatpush3.bf16.msra.mxu1 %v1562_v19  ;;  %v1571_v30 = vld [vmem:[#allocation10 + $0x70] sm:$0xff]   ;;  %v1573_v32 = vld [vmem:[#allocation10 + $0x78] sm:$0xff]  }
 0x326   :  { %v636_v41 = vshll.u32 %v626_v36, 16  ;;  %v661_v55 = vrot.slane %v626_v36, 1  ;;  %1419 = vmatprep.subr.bf16.mxu1 %v1563_v20  ;;  %v1572_v31 = vld [vmem:[#allocation10 + $0x30] sm:$0xff]   ;;  %v1577_v20 = vld [vmem:[%s2077_s10 + $0x10] sm:$0xff]  }
 0x327   :  { %v605_v38 = vpack.c.bf16 %v603_v35, %v602_v34  ;;  %v624_v39 = vsel %vm1897_vm2, 0, %v612_v33  ;;  %v1574_v33 = vld [vmem:[#allocation10 + $0x38] sm:$0xff]   ;;  %v1319_v34 = vld [vmem:[%s2074_s7] ss:$0 sm:$0xff] }
 0x328   :  { %v631_v40 = vshll.u32 %v624_v39, 16  ;;  %v629_v43 = vshrl.u32 %v624_v39, 16  ;;  %v638_v49 = vrot.slane %v636_v41, 1  ;;  %v660_v53 = vrot.slane %v624_v39, 1 }
 0x329   :  { %v614_v42 = vshrl.u32 %v605_v38, 16  ;;  %v617_v47 = vshll.u32 %v605_v38, 16  ;;  %1420 = vmatpush3.bf16.msra.mxu1 %v1564_v21 }
 0x32a   :  { %v633_v44 = vrot.slane %v631_v40, 1  ;;  %v662_v58 = vsel %vm179_vm4, %v660_v53, %v661_v55  ;;  %1421 = vmatprep.subr.bf16.mxu1 %v1565_v22 }
 0x32b   :  { %v616_v46 = vrot.slane %v614_v42, 7 }
 0x32c   :  { %v634_v48 = vor.u32 %v633_v44, %v629_v43 }
 0x32d   :  { %v619_v50 = vor.u32 %v617_v47, %v616_v46  ;;  %v627_v51 = vsel %vm1897_vm2, %v616_v46, 0  ;;  %1422 = vmatpush3.bf16.msra.mxu1 %v1566_v23 }
 0x32e   :  { %v639_v52 = vsel %vm146_vm3, %v634_v48, %v638_v49  ;;  %v648_v57 = vshll.u32 %v627_v51, 16  ;;  %v664_v3 = vrot.slane %v627_v51, 1  ;;  %1423 = vmatprep.subr.bf16.mxu1 %v1567_v25 }
 0x32f   :  { %652 = vrot.lane.b32.xlu0 %v639_v52, %s1732_s8  ;;  %v625_v54 = vsel %vm1897_vm2, 0, %v619_v50 }
 0x330   :  { %v643_v56 = vshll.u32 %v625_v54, 16  ;;  %v641_v59 = vshrl.u32 %v625_v54, 16  ;;  %v650_v62 = vrot.slane %v648_v57, 1  ;;  %v663_v2 = vrot.slane %v625_v54, 1 }
 0x331   :  { %1424 = vmatpush3.bf16.msra.mxu1 %v1568_v26 }
 0x332   :  { %v645_v60 = vrot.slane %v643_v56, 1  ;;  %v665_v4 = vsel %vm179_vm4, %v663_v2, %v664_v3  ;;  %1425 = vmatprep.subr.bf16.mxu1 %v1569_v28 }
 0x333   :  { %666 = vrot.lane.b32.xlu0 %v662_v58, %s1727_s15 }
 0x334   :  { %v646_v61 = vor.u32 %v645_v60, %v641_v59 }
 0x335   :  { %1426 = vmatpush3.bf16.msra.mxu1 %v1570_v29 }
 0x336   :  { %v651_v63 = vsel %vm146_vm3, %v646_v61, %v650_v62  ;;  %1427 = vmatprep.subr.bf16.mxu1 %v1571_v30  ;;  %v1578_v30 = vld [vmem:[%s2077_s10 + $0x18] sm:$0xff]  }
 0x337   :  { %654 = vrot.lane.b32.xlu1 %v651_v63, %s1732_s8 }
 0x339   :  { %1428 = vmatpush3.bf16.msra.mxu1 %v1572_v31  ;;  %v1579_v31 = vld [vmem:[%s2077_s10 + $0x20] sm:$0xff]  }
 0x33a   :  { %1429 = vmatprep.subr.bf16.mxu1 %v1573_v32  ;;  %v1580_v32 = vld [vmem:[%s2077_s10 + $0x28] sm:$0xff]  }
 0x33b   :  { %668 = vrot.lane.b32.xlu1 %v665_v4, %s1727_s15 }
 0x33d   :  { %1430 = vmatpush3.bf16.msra.mxu1 %v1574_v33  ;;  %v1581_v33 = vld [vmem:[%s2077_s10 + $0x30] sm:$0xff]  }
 0x3a1   :  { %v653_v5 = vpop.permute.xlu0 %652 }
 0x3a2   :  { %v671_v6 = vsel %vm190_vm5, %v624_v39, %v653_v5 }
 0x3a5   :  { %v667_v7 = vpop.permute.xlu0 %666 }
 0x3a6   :  { %v675_v10 = vsel %vm195_vm6, %v671_v6, %v667_v7 }
 0x3a7   :  { %1489 = vmatprep.mubr.msk.bf16.mxu0 %vm200_vm7, %v675_v10 }
 0x3a9   :  { %v655_v12 = vpop.permute.xlu1 %654 }
 0x3aa   :  { %v673_v13 = vsel %vm190_vm5, %v625_v54, %v655_v12 }
 0x3ad   :  { %v669_v14 = vpop.permute.xlu1 %668 }
 0x3ae   :  { %v677_v15 = vsel %vm195_vm6, %v673_v13, %v669_v14 }
 0x3af   :  { %1490 = vmatmul.mubr.msk.bf16.vlgmr.msra.gmra.mrb[4].mxu0 %vm200_vm7, %v677_v15  ;;  %v1576_v15 = vld [vmem:[%s2077_s10 + $0x8] sm:$0xff]  }
 0x3b0   :  { %1494 = vmatpush3.bf16.msra.mxu0 %v1575_v9 }
 0x3b1   :  { %1495 = vmatprep.subr.bf16.mxu0 %v1576_v15 }
 0x3b4   :  { %1496 = vmatpush3.bf16.msra.mxu0 %v1576_v15 }
 0x3b5   :  { %1497 = vmatprep.subr.bf16.mxu0 %v1577_v20 }
 0x3b8   :  { %1498 = vmatpush3.bf16.msra.mxu0 %v1577_v20 }
 0x3b9   :  { %1499 = vmatprep.subr.bf16.mxu0 %v1578_v30 }
 0x3bc   :  { %1500 = vmatpush3.bf16.msra.mxu0 %v1578_v30 }
 0x3bd   :  { %1501 = vmatprep.subr.bf16.mxu0 %v1579_v31 }
 0x3c0   :  { %1502 = vmatpush3.bf16.msra.mxu0 %v1579_v31 }
 0x3c1   :  { %1503 = vmatprep.subr.bf16.mxu0 %v1580_v32 }
 0x3c4   :  { %1504 = vmatpush3.bf16.msra.mxu0 %v1580_v32 }
 0x3c5   :  { %1505 = vmatprep.subr.bf16.mxu0 %v1581_v33 }
 0x3c8   :  { %1506 = vmatpush3.bf16.msra.mxu0 %v1581_v33 }
 0x482   :  { %v1491_v35 = vpop.f32.mrb[4].mxu0 }
 0x483   :  { %v804_v36 = vadd.f32 %v1491_v35, %v1319_v34  ;;  %v780_v37 = vpop.f32.mrb[5].mxu0  ;;  %v1207_v35 = vld [vmem:[%s2068_s1 + $0x8] sm:$0xff] }
 0x484   :  { %v802_v38 = vadd.f32 %v1319_v34, %v780_v37  ;;  %v1492_v39 = vpop.f32.mrb[6].mxu0  ;;  %v1208_v37 = vld [vmem:[%s2068_s1 + $0x10] sm:$0xff]  ;;  %vm1211_vm8 = vcmp.gt.f32.partialorder %v1207_v35, 0.5 }
 0x485   :  { %v805_v40 = vadd.f32 %v1492_v39, %v1319_v34  ;;  %v783_v41 = vpop.f32.mrb[7].mxu0  ;;  %v808_v43 = vmax.f32 %v804_v36, 0.0  ;;  %v1206_v36 = vld [vmem:[%s2068_s1] sm:$0xff]  ;;  %vm1212_vm10 = vcmp.gt.f32.partialorder %v1208_v37, 0.5  ;;  %v1209_v39 = vld [vmem:[%s2068_s1 + $0x18] sm:$0xff] }
 0x486   :  { %v803_v42 = vadd.f32 %v1319_v34, %v783_v41  ;;  %v806_v45 = vmax.f32 %v802_v38, 0.0  ;;  %v1582_v34 = vld [vmem:[%s2077_s10 + $0x38] sm:$0xff]   ;;  %v1733_v38 = vmov 0   ;;  %vm1210_vm9 = vcmp.gt.f32.partialorder %v1206_v36, 0.5 }
 0x487   :  { %v809_v44 = vmax.f32 %v805_v40, 0.0  ;;  %1507 = vmatprep.subr.bf16.mxu0 %v1582_v34  ;;  %1524 = vset.pattern.permute.xlu1 %v1733_v38  ;;  %v1215_v40 = vsel %vm1211_vm8, 1, %v1733_v38  ;;  %v1214_v41 = vsel %vm1210_vm9, 1, %v1733_v38  ;;  %vm1213_vm11 = vcmp.gt.f32.partialorder %v1209_v39, 0.5 }
 0x488   :  { %v807_v46 = vmax.f32 %v803_v42, 0.0  ;;  %1508 = vmatpush3.bf16.msra.mxu0 %v1582_v34  ;;  %1523 = vset.pattern.permute.xlu0 %v1733_v38  ;;  %v1216_v42 = vsel %vm1212_vm10, 1, %v1733_v38 }
 0x489   :  { %v811_v47 = vpack.c.bf16 %v809_v44, %v808_v43  ;;  %v1217_v43 = vsel %vm1213_vm11, 1, %v1733_v38 }
 0x48a   :  { %v810_v48 = vpack.c.bf16 %v807_v46, %v806_v45  ;;  %v1338_v46 = vld [vmem:[%s2076_s9] ss:$0 sm:$0xff] }
 0x48b   :  { %v820_v49 = vshrl.u32 %v811_v47, 16  ;;  %v823_v52 = vshll.u32 %v811_v47, 16 }
 0x48c   :  { %v813_v50 = vshrl.u32 %v810_v48, 16  ;;  %v816_v54 = vshll.u32 %v810_v48, 16 }
 0x48d   :  { %v822_v51 = vrot.slane %v820_v49, 7 }
 0x48e   :  { %v815_v53 = vrot.slane %v813_v50, 7 }
 0x48f   :  { %v825_v55 = vor.u32 %v823_v52, %v822_v51  ;;  %v833_v56 = vsel %vm1897_vm2, %v822_v51, 0 }
 0x490   :  { %v818_v57 = vor.u32 %v816_v54, %v815_v53  ;;  %v832_v58 = vsel %vm1897_vm2, %v815_v53, 0  ;;  %v854_v62 = vshll.u32 %v833_v56, 16  ;;  %v870_v22 = vrot.slane %v833_v56, 1 }
 0x491   :  { %v831_v59 = vsel %vm1897_vm2, 0, %v825_v55  ;;  %v867_v2 = vrot.slane %v832_v58, 1  ;;  %v842_v4 = vshll.u32 %v832_v58, 16 }
 0x492   :  { %v830_v60 = vsel %vm1897_vm2, 0, %v818_v57  ;;  %v849_v61 = vshll.u32 %v831_v59, 16  ;;  %v847_v5 = vshrl.u32 %v831_v59, 16  ;;  %v856_v14 = vrot.slane %v854_v62, 1 }
 0x493   :  { %v866_v63 = vrot.slane %v830_v60, 1  ;;  %v837_v3 = vshll.u32 %v830_v60, 16  ;;  %v835_v10 = vshrl.u32 %v830_v60, 16  ;;  %v844_v17 = vrot.slane %v842_v4, 1 }
 0x494   :  { %v851_v6 = vrot.slane %v849_v61, 1  ;;  %v869_v21 = vrot.slane %v831_v59, 1 }
 0x495   :  { %v868_v7 = vsel %vm179_vm4, %v866_v63, %v867_v2  ;;  %v839_v12 = vrot.slane %v837_v3, 1 }
 0x496   :  { %1336 = vmatprep.mubr.msk.bf16.mxu1 %vm195_vm6, %v868_v7  ;;  %v852_v13 = vor.u32 %v851_v6, %v847_v5  ;;  %v871_v26 = vsel %vm179_vm4, %v869_v21, %v870_v22 }
 0x497   :  { %v840_v16 = vor.u32 %v839_v12, %v835_v10  ;;  %v1347_v10 = vld [vmem:[%s2078_s11] ss:$0 sm:$0xff]  ;;  %s1695_s11 = scalar_lea.vmem %s1264_s18, 256 }
 0x498   :  { %v857_v18 = vsel %vm146_vm3, %v852_v13, %v856_v14  ;;  %p1696_p12 = scmp.ne.s32.totalorder %s1264_s18, %s1695_s11  ;;  %p1701_p0 = scmp.lt.s32.totalorder %s1695_s11, %s1695_s11 }
 0x499   :  { %860 = vrot.lane.b32.xlu1 %v857_v18, %s1727_s15  ;;  %v845_v19 = vsel %vm146_vm3, %v840_v16, %v844_v17 }
 0x49a   :  { %858 = vrot.lane.b32.xlu0 %v845_v19, %s1727_s15  ;;  %p1702_p1 = por %p1701_p0, %p1700_p13 }
 0x49c   :  { %p1703_p2 = pnand %p1702_p1, %p1696_p12 }
 0x49d   :  { %1222 = vperm.xlu1 %1524, %v1215_v40  }
 0x49e   :  { %1219 = vperm.xlu0 %1523, %v1214_v41  }
 0x4a1   :  { %1225 = vperm.xlu1 %1524, %v1216_v42  }
 0x4a2   :  { %1228 = vperm.xlu0 %1523, %v1217_v43  }
 0x50b   :  { %v861_v28 = vpop.permute.xlu1 %860 }
 0x50c   :  { %v859_v23 = vpop.permute.xlu0 %858  ;;  %v876_v29 = vsel %vm195_vm6, %v831_v59, %v861_v28 }
 0x50d   :  { %v873_v25 = vsel %vm195_vm6, %v830_v60, %v859_v23 }
 0x50e   :  { %1045 = vmatmul.mubr.bf16.vlgmr.msra.gmra.mrb[8].mxu1 %v873_v25 }
 0x50f   :  { %1337 = vmatprep.mubr.msk.bf16.mxu1 %vm195_vm6, %v871_v26 }
 0x516   :  { %1053 = vmatmul.mubr.bf16.gmra.mrb[12].mxu1 %v876_v29 }
 0x51c   :  { %v1223_v0 = vpop.permute.xlu1 %1222 }
 0x51d   :  { %vm1231_vm14 = vcmp.eq.s32.totalorder %v1223_v0, 1 }
 0x520   :  { %v1226_v12 = vpop.permute.xlu1 %1225 }
 0x521   :  { %vm1232_vm12 = vcmp.eq.s32.totalorder %v1226_v12, 1 }
 0x5e1   :  { %v1431_v44 = vpop.f32.mrb[8].mxu1 }
 0x5e2   :  { %v1432_v45 = vpop.f32.mrb[9].mxu1 }
 0x5e3   :  { %v1433_v47 = vadd.f32 %v1432_v45, %v1431_v44  ;;  %v1434_v48 = vpop.f32.mrb[10].mxu1 }
 0x5e4   :  { %v1435_v49 = vpop.f32.mrb[11].mxu1 }
 0x5e5   :  { %v1068_v50 = vadd.f32 %v1433_v47, %v1338_v46  ;;  %v1436_v51 = vadd.f32 %v1435_v49, %v1434_v48 }
 0x5e7   :  { %v1072_v52 = vmax.f32 %v1068_v50, 0.0  ;;  %v1069_v53 = vadd.f32 %v1436_v51, %v1338_v46 }
 0x5e9   :  { %v1073_v54 = vmax.f32 %v1069_v53, 0.0  ;;  %v1437_v55 = vpop.f32.mrb[12].mxu1  ;;  %v1076_v57 = vadd.f32 %v1072_v52, %v115_v8 }
 0x5ea   :  { %v1438_v56 = vpop.f32.mrb[13].mxu1 }
 0x5eb   :  { %v1077_v58 = vadd.f32 %v1073_v54, %v116_v11  ;;  %v1439_v59 = vadd.f32 %v1438_v56, %v1437_v55  ;;  %v1440_v60 = vpop.f32.mrb[14].mxu1  ;;  %v1220_v11 = vpop.permute.xlu0 %1219 }
 0x5ec   :  { %v1441_v61 = vpop.f32.mrb[15].mxu1  ;;  %vm1230_vm15 = vcmp.eq.s32.totalorder %v1220_v11, 1 }
 0x5ed   :  { %v1070_v62 = vadd.f32 %v1439_v59, %v1338_v46  ;;  %v1442_v63 = vadd.f32 %v1441_v61, %v1440_v60  ;;  %v1080_v2 = vpack.c.bf16 %v1077_v58, %v1076_v57 }
 0x5ef   :  { %v1074_v3 = vmax.f32 %v1070_v62, 0.0  ;;  %v1071_v4 = vadd.f32 %v1442_v63, %v1338_v46  ;;  %1509 = vmatprep.mubr.bf16.mxu0 %v1080_v2  ;;  %v1229_v9 = vpop.permute.xlu0 %1228 }
 0x5f0   :  { %vm1233_vm13 = vcmp.eq.s32.totalorder %v1229_v9, 1 }
 0x5f1   :  { %v1075_v5 = vmax.f32 %v1071_v4, 0.0  ;;  %v1078_v6 = vadd.f32 %v1074_v3, %v117_v24 }
 0x5f3   :  { %v1079_v7 = vadd.f32 %v1075_v5, %v118_v27 }
 0x5f5   :  { %v1081_v8 = vpack.c.bf16 %v1079_v7, %v1078_v6 }
 0x5f7   :  { %1510 = vmatmul.mubr.bf16.vlgmr.msra.gmra.mrb[8].mxu0 %v1081_v8 }
 0x6ca   :  { %v1511_v13 = vpop.f32.mrb[8].mxu0 }
 0x6cb   :  { %v1204_v14 = vadd.f32 %v1511_v13, %v1347_v10  ;;  %v1180_v15 = vpop.f32.mrb[9].mxu0 }
 0x6cc   :  { %v1202_v16 = vadd.f32 %v1347_v10, %v1180_v15  ;;  %v1512_v17 = vpop.f32.mrb[10].mxu0 }
 0x6cd   :  { %v1205_v24 = vadd.f32 %v1512_v17, %v1347_v10  ;;  %v1183_v18 = vpop.f32.mrb[11].mxu0  ;;  %v1236_v27 = vsel %vm1232_vm12, 0.0, %v1204_v14 }
 0x6ce   :  { %v1203_v1 = vadd.f32 %v1347_v10, %v1183_v18  ;;  %v1234_v20 = vsel %vm1230_vm15, 0.0, %v1202_v16 }
 0x6cf   :  { %v1237_v19 = vsel %vm1233_vm13, 0.0, %v1205_v24 }
 0x6d0   :  { %v1364_v21 = vpack.c.bf16 %v1237_v19, %v1236_v27  ;;  %v1235_v22 = vsel %vm1231_vm14, 0.0, %v1203_v1 }
 0x6d1   :  { %v1359_v23 = vpack.c.bf16 %v1235_v22, %v1234_v20 }
 0x6d2   :  { %1366 = vst [vmem:[#allocation11 + $0x8] sm:$0xff] %v1364_v21  }
 0x6d3   :  { %1360 = vst [vmem:[#allocation11] sm:$0xff] %v1359_v23  }
 0x6d4   :  { %1706 = shalt.err (!%p1703_p2)
}
 0x6d5   :  { %s1707_s19 = scalar_lea.hbm %s2079_s12, 256 }
 0x6d6   :  { %p1708_p3 = scmp.ne.s32.totalorder %s2079_s12, %s1707_s19  ;;  %p1711_p4 = scmp.lt.u32.totalorder %s1707_s19, %s2079_s12 }
 0x6d8   :  { %p1713_p5 = pnand %p1711_p4, %p1708_p3 }
 0x6da   :  { %1716 = shalt.err (!%p1713_p5)
}
 0x6db   :  { %1269 = dma.vmem_to_hbm [thread:$0]  %s1264_s18, 256, %s2079_s12, [#allocation4], %s1727_s15, %s1727_s15, %s1728_s16  }
 0x6dc   :  { %1723 = dma.done.wait [#allocation4], 256  }
 0x6dd   :  { %1724 = vsyncadd [#allocation4], 4294967040 }
 0x6de   :  { %1273 = vsyncpa [#allocation3], 1 }
 0x6df   :  { %1274 = vsyncpa [#allocation6], 1 }
 0x6e0   :  { %1275 = vsyncpa [#allocation9], 1 }
 0x6e1   :  { %1276 = vsyncpa [#allocation4], 1 }

</bundles_post_ra>
